<compile_context>
chip_gen: v7x
topology: tpu7x:2x2x1
jax: 0.10.0
libtpu: 0.0.40
codegen_flags: <defaults>
</compile_context>

<pallas_src>
import jax
import jax.numpy as jnp
from jax import lax
from jax.experimental import pallas as pl
from jax.experimental.pallas import tpu as pltpu


def critic_kernel(x_ref, w1_ref, b1_ref, w2_ref, b2_ref, w3r_ref, b3_ref, o_ref):
    # Whole-batch-tile MLP forward; all operands resident in VMEM (b3 in SMEM).
    x = x_ref[...]                                                    # (TB, S)
    h1 = jnp.tanh(
        jnp.dot(x, w1_ref[...], preferred_element_type=jnp.float32)
        + b1_ref[...]                                                 # (1, H) broadcast
    )
    h2 = jnp.tanh(
        jnp.dot(h1, w2_ref[...], preferred_element_type=jnp.float32)
        + b2_ref[...]
    )
    # Final layer: contract the hidden axis of h2 (TB, H) against the (1, H)
    # weight row -> (1, TB).  This replaces the (TB,H)x(H,1) N=1 matmul and
    # yields the value vector in a lane-dense row layout for full-width stores.
    v_row = lax.dot_general(
        w3r_ref[...], h2,
        dimension_numbers=(((1,), (1,)), ((), ())),
        preferred_element_type=jnp.float32,
    ) + b3_ref[0]                                                     # (1, TB)
    o_ref[...] = v_row.astype(o_ref.dtype)


_MAX_BATCH_TILE = 2048  # rows per grid step; per-step VMEM stays < ~2 MiB


def _plan_batch(B, batch_tile):
    """Returns (tile_rows, padded_batch)."""
    if batch_tile is not None:
        TB = int(batch_tile)
        if TB <= 0:
            raise ValueError("batch_tile must be positive")
        if TB < B and TB % 128 != 0:
            raise ValueError(
                "batch_tile must be a multiple of 128 (lane-dense output tiles) "
                "or cover the whole batch"
            )
        TB = min(TB, B) if TB >= B else TB
        Bp = B if TB == B else pl.cdiv(B, TB) * TB
        return TB, Bp
    if B <= _MAX_BATCH_TILE:
        return B, B                       # single tile, no padding needed
    TB = _MAX_BATCH_TILE
    return TB, pl.cdiv(B, TB) * TB        # pad ragged tail with zero rows


def critic_forward(x, w1, b1, w2, b2, w3, b3, *, batch_tile=None):
    x = jnp.asarray(x, jnp.float32)
    B, S = x.shape
    H = w1.shape[1]

    TB, Bp = _plan_batch(B, batch_tile)
    if Bp != B:
        x_in = jnp.zeros((Bp, S), x.dtype).at[:B].set(x)
    else:
        x_in = x
    num_tiles = Bp // TB

    w3_row = w3.reshape(1, H)   # (H, 1) -> (1, H) row for the lane-dense contraction
    b3_s = b3.reshape(1)        # scalar bias, lives in SMEM

    const = lambda i: (0, 0)    # weights/biases: same (only) block for every step

    out_row = pl.pallas_call(
        critic_kernel,
        out_shape=jax.ShapeDtypeStruct((1, Bp), jnp.float32),
        grid_spec=pltpu.PrefetchScalarGridSpec(
            num_scalar_prefetch=0,
            grid=(num_tiles,),
            in_specs=[
                pl.BlockSpec((TB, S), lambda i: (i, 0)),             # x: tile over batch
                pl.BlockSpec((S, H), const),                         # W1 (fetched once)
                pl.BlockSpec((1, H), const),                         # b1
                pl.BlockSpec((H, H), const),                         # W2
                pl.BlockSpec((1, H), const),                         # b2
                pl.BlockSpec((1, H), const),                         # W3 as a row
                pl.BlockSpec(memory_space=pltpu.MemorySpace.SMEM),   # b3 scalar
            ],
            out_specs=pl.BlockSpec((1, TB), lambda i: (0, i)),       # lane-dense row
        ),
        compiler_params=pltpu.CompilerParams(
            dimension_semantics=("parallel",),
        ),
    )(x_in, w1, b1, w2, b2, w3_row, b3_s)

    # (1, B_pad) lane-dense slab -> (B, 1) to match the PyTorch module's output.
    return out_row[0, :B].reshape(B, 1)


def init_params(key, state_dim, hidden_dim):
    """Deterministic synthetic init (PyTorch-Linear-like uniform fan-in scaling)."""
    ks = jax.random.split(key, 6)

    def lin(kw, kb, fan_in, fan_out):
        bound = 1.0 / jnp.sqrt(fan_in)
        w = jax.random.uniform(kw, (fan_in, fan_out), jnp.float32, -bound, bound)
        b = jax.random.uniform(kb, (1, fan_out), jnp.float32, -bound, bound)
        return w, b

    w1, b1 = lin(ks[0], ks[1], state_dim, hidden_dim)
    w2, b2 = lin(ks[2], ks[3], hidden_dim, hidden_dim)
    w3, b3 = lin(ks[4], ks[5], hidden_dim, 1)
    return w1, b1, w2, b2, w3, b3


if __name__ == "__main__":
    key = jax.random.PRNGKey(0)
    k_small, k_multi, k_ragged, k_p = jax.random.split(key, 4)

    STATE_DIM, HIDDEN = 8, 64
    params = init_params(k_p, STATE_DIM, HIDDEN)
    w1, b1, w2, b2, w3, b3 = params

    def ref_fwd(x):
        h = jnp.tanh(x @ w1 + b1)
        h = jnp.tanh(h @ w2 + b2)
        return h @ w3 + b3

    # 1) Small batch: single-tile path (TB == B, no padding).
    x_small = jax.random.normal(k_small, (8, STATE_DIM), jnp.float32)
    out_small = jax.block_until_ready(critic_forward(x_small, *params))
    assert out_small.shape == (8, 1)
    assert jnp.allclose(out_small, ref_fwd(x_small), atol=1e-5, rtol=1e-5)

    # 2) Multi-tile, lane-dense pipelined path (forced TB=128 -> grid of 2).
    x_multi = jax.random.normal(k_multi, (256, STATE_DIM), jnp.float32)
    out_multi = jax.block_until_ready(critic_forward(x_multi, *params, batch_tile=128))
    assert out_multi.shape == (256, 1)
    assert jnp.allclose(out_multi, ref_fwd(x_multi), atol=1e-5, rtol=1e-5)

    # 3) Ragged batch: zero-padded up to a multiple of the tile, then sliced.
    x_ragged = jax.random.normal(k_ragged, (200, STATE_DIM), jnp.float32)
    out_ragged = jax.block_until_ready(critic_forward(x_ragged, *params, batch_tile=128))
    assert out_ragged.shape == (200, 1)
    assert jnp.allclose(out_ragged, ref_fwd(x_ragged), atol=1e-5, rtol=1e-5)

    print("KERNEL_OK")
</pallas_src>

<mosaic_0001>
module attributes {stable_mosaic.version = 11 : i64} {
  func.func @critic_kernel(%arg0: i32, %arg1: memref<8x8xf32, #tpu.memory_space<vmem>>, %arg2: memref<8x64xf32, #tpu.memory_space<vmem>>, %arg3: memref<1x64xf32, #tpu.memory_space<vmem>>, %arg4: memref<64x64xf32, #tpu.memory_space<vmem>>, %arg5: memref<1x64xf32, #tpu.memory_space<vmem>>, %arg6: memref<1x64xf32, #tpu.memory_space<vmem>>, %arg7: memref<1xf32, #tpu.memory_space<smem>>, %arg8: memref<1x8xf32, #tpu.memory_space<vmem>>) attributes {dimension_semantics = [#tpu.dimension_semantics<parallel>], iteration_bounds = array<i64: 1>, scalar_prefetch = 0 : i64, scratch_operands = 0 : i64, tpu.core_type = #tpu.core_type<tc>, window_params = [{transform_indices = @transform_0, window_bounds = array<i64: 8, 8>}, {pipeline_mode = #tpu.pipeline_mode<synchronous>, transform_indices = @transform_1, window_bounds = array<i64: 8, 64>}, {pipeline_mode = #tpu.pipeline_mode<synchronous>, transform_indices = @transform_2, window_bounds = array<i64: 1, 64>}, {pipeline_mode = #tpu.pipeline_mode<synchronous>, transform_indices = @transform_3, window_bounds = array<i64: 64, 64>}, {pipeline_mode = #tpu.pipeline_mode<synchronous>, transform_indices = @transform_4, window_bounds = array<i64: 1, 64>}, {pipeline_mode = #tpu.pipeline_mode<synchronous>, transform_indices = @transform_5, window_bounds = array<i64: 1, 64>}, {transform_indices = @transform_6, window_bounds = array<i64: 1>}, {transform_indices = @transform_7, window_bounds = array<i64: 1, 8>}]} {
    %c0 = arith.constant 0 : index
    %c0_0 = arith.constant 0 : index
    %0 = vector.load %arg1[%c0, %c0_0] : memref<8x8xf32, #tpu.memory_space<vmem>>, vector<8x8xf32>
    %c0_1 = arith.constant 0 : index
    %c0_2 = arith.constant 0 : index
    %1 = vector.load %arg2[%c0_1, %c0_2] : memref<8x64xf32, #tpu.memory_space<vmem>>, vector<8x64xf32>
    %cst = arith.constant dense<0.000000e+00> : vector<8x64xf32>
    %2 = tpu.matmul %0, %1, %cst {dimension_numbers = #tpu.dot_dimension_numbers<[1], [0], [0], [1], [0, 0, 1, 1], [], []>} : vector<8x8xf32>, vector<8x64xf32>, vector<8x64xf32> -> vector<8x64xf32>
    %c0_3 = arith.constant 0 : index
    %c0_4 = arith.constant 0 : index
    %3 = vector.load %arg3[%c0_3, %c0_4] : memref<1x64xf32, #tpu.memory_space<vmem>>, vector<1x64xf32>
    %4 = vector.broadcast %3 : vector<1x64xf32> to vector<8x64xf32>
    %5 = arith.addf %2, %4 : vector<8x64xf32>
    %6 = math.tanh %5 : vector<8x64xf32>
    %c0_5 = arith.constant 0 : index
    %c0_6 = arith.constant 0 : index
    %7 = vector.load %arg4[%c0_5, %c0_6] : memref<64x64xf32, #tpu.memory_space<vmem>>, vector<64x64xf32>
    %cst_7 = arith.constant dense<0.000000e+00> : vector<8x64xf32>
    %8 = tpu.matmul %6, %7, %cst_7 {dimension_numbers = #tpu.dot_dimension_numbers<[1], [0], [0], [1], [0, 0, 1, 1], [], []>} : vector<8x64xf32>, vector<64x64xf32>, vector<8x64xf32> -> vector<8x64xf32>
    %c0_8 = arith.constant 0 : index
    %c0_9 = arith.constant 0 : index
    %9 = vector.load %arg5[%c0_8, %c0_9] : memref<1x64xf32, #tpu.memory_space<vmem>>, vector<1x64xf32>
    %10 = vector.broadcast %9 : vector<1x64xf32> to vector<8x64xf32>
    %11 = arith.addf %8, %10 : vector<8x64xf32>
    %12 = math.tanh %11 : vector<8x64xf32>
    %c0_10 = arith.constant 0 : index
    %c0_11 = arith.constant 0 : index
    %13 = vector.load %arg6[%c0_10, %c0_11] : memref<1x64xf32, #tpu.memory_space<vmem>>, vector<1x64xf32>
    %cst_12 = arith.constant dense<0.000000e+00> : vector<1x8xf32>
    %14 = tpu.matmul %13, %12, %cst_12 {dimension_numbers = #tpu.dot_dimension_numbers<[1], [1], [0], [0], [0, 0, 1, 0], [], []>} : vector<1x64xf32>, vector<8x64xf32>, vector<1x8xf32> -> vector<1x8xf32>
    %c0_13 = arith.constant 0 : index
    %15 = memref.load %arg7[%c0_13] : memref<1xf32, #tpu.memory_space<smem>>
    %16 = vector.broadcast %15 : f32 to vector<1x8xf32>
    %17 = arith.addf %14, %16 : vector<1x8xf32>
    %c0_14 = arith.constant 0 : index
    %c0_15 = arith.constant 0 : index
    %18 = vector.load %arg8[%c0_14, %c0_15] : memref<1x8xf32, #tpu.memory_space<vmem>>, vector<1x8xf32>
    tpu.vector_store %arg8[%c0_14, %c0_15], %17 {strides = array<i32>} : memref<1x8xf32, #tpu.memory_space<vmem>>, vector<1x8xf32>,
    return
  }
  func.func @transform_0(%arg0: i32) -> (i32, i32) {
    %c0_i32 = arith.constant 0 : i32
    %c0_i32_0 = arith.constant 0 : i32
    return %arg0, %c0_i32 : i32, i32
  }
  func.func @transform_1(%arg0: i32) -> (i32, i32) {
    %c0_i32 = arith.constant 0 : i32
    %c0_i32_0 = arith.constant 0 : i32
    %c0_i32_1 = arith.constant 0 : i32
    return %c0_i32, %c0_i32_0 : i32, i32
  }
  func.func @transform_2(%arg0: i32) -> (i32, i32) {
    %c0_i32 = arith.constant 0 : i32
    %c0_i32_0 = arith.constant 0 : i32
    %c0_i32_1 = arith.constant 0 : i32
    return %c0_i32, %c0_i32_0 : i32, i32
  }
  func.func @transform_3(%arg0: i32) -> (i32, i32) {
    %c0_i32 = arith.constant 0 : i32
    %c0_i32_0 = arith.constant 0 : i32
    %c0_i32_1 = arith.constant 0 : i32
    return %c0_i32, %c0_i32_0 : i32, i32
  }
  func.func @transform_4(%arg0: i32) -> (i32, i32) {
    %c0_i32 = arith.constant 0 : i32
    %c0_i32_0 = arith.constant 0 : i32
    %c0_i32_1 = arith.constant 0 : i32
    return %c0_i32, %c0_i32_0 : i32, i32
  }
  func.func @transform_5(%arg0: i32) -> (i32, i32) {
    %c0_i32 = arith.constant 0 : i32
    %c0_i32_0 = arith.constant 0 : i32
    %c0_i32_1 = arith.constant 0 : i32
    return %c0_i32, %c0_i32_0 : i32, i32
  }
  func.func @transform_6(%arg0: i32) -> i32 {
    %c0_i32 = arith.constant 0 : i32
    %c0_i32_0 = arith.constant 0 : i32
    return %c0_i32 : i32
  }
  func.func @transform_7(%arg0: i32) -> (i32, i32) {
    %c0_i32 = arith.constant 0 : i32
    %c0_i32_0 = arith.constant 0 : i32
    return %c0_i32, %arg0 : i32, i32
  }
}

</mosaic_0001>

<bundles_post_ra>
// kernel: tpu_custom_call.1
= control target key start
LH: loop header
LB: loop body
LE: loop exit
PB: predicated region body
PF: predicated region fallthrough
CT: control target
= control target key end

     0   :  { %13 = vsyncpa [#allocation4], 0  ;;  %s612_s0 = inlined_call_operand.hbm [shape: f32[8,8], index: 0, kind: input, shape index: {}]   ;;  %s613_s1 = inlined_call_operand.hbm [shape: f32[8,64], index: 1, kind: input, shape index: {}]   ;;  %s614_s2 = inlined_call_operand.vmem [shape: f32[1,64], index: 2, kind: input, shape index: {}]   ;;  %s615_s3 = inlined_call_operand.hbm [shape: f32[64,64], index: 3, kind: input, shape index: {}]   ;;  %s616_s4 = inlined_call_operand.vmem [shape: f32[1,64], index: 4, kind: input, shape index: {}]   ;;  %s617_s5 = inlined_call_operand.vmem [shape: f32[1,64], index: 5, kind: input, shape index: {}]   ;;  %s618_s6 = inlined_call_operand.<no memory space> [shape: f32[1], index: 6, kind: input, shape index: {}]   ;;  %s619_s7 = inlined_call_operand.hbm [shape: f32[1,8], index: 7, kind: output, shape index: {}]  }
   0x1   :  { %14 = vsyncpa [#allocation7], 0 }
   0x2   :  { %15 = vsyncpa [#allocation5], 0  ;;  %s503_s24 = smov [#allocation6]   ;;  %s504_s26 = smov [#allocation3]  }
   0x3   :  { %s32_s25 = sshll.u32 %s503_s24, 4  ;;  %s22_s27 = sshll.u32 %s504_s26, 4  ;;  %s33_s25 = int_to_ptr.vmem [resolvable:$true] %s32_s25  ;;  %s23_s27 = int_to_ptr.vmem [resolvable:$true] %s22_s27 }
   0x4   :  { %s409_s30 = scalar_lea.hbm %s613_s1, 128 }
   0x5   :  { %p410_p0 = scmp.ne.s32.totalorder %s613_s1, %s409_s30  ;;  %p413_p1 = scmp.lt.u32.totalorder %s409_s30, %s613_s1 }
   0x7   :  { %p415_p2 = pnand %p413_p1, %p410_p0 }
   0x9   :  { %418 = shalt.err (!%p415_p2)
}
   0xa   :  { %s419_s12 = scalar_lea.vmem %s33_s25, 128  ;;  %p424_p4 = scmp.lt.s32.totalorder %s33_s25, %s33_s25 }
   0xb   :  { %p420_p3 = scmp.ne.s32.totalorder %s33_s25, %s419_s12  ;;  %p425_p5 = scmp.lt.s32.totalorder %s419_s12, %s419_s12 }
   0xd   :  { %p426_p6 = por %p425_p5, %p424_p4 }
   0xf   :  { %p427_p7 = pnand %p426_p6, %p420_p3 }
  0x11   :  { %430 = shalt.err (!%p427_p7)
}
  0x12   :  { %35 = dma.hbm_to_vmem [thread:$0]  %s613_s1, 128, %s33_s25, [#allocation7]  }
  0x13   :  { %s431_s17 = scalar_lea.hbm %s612_s0, 128 }
  0x14   :  { %p432_p8 = scmp.ne.s32.totalorder %s612_s0, %s431_s17  ;;  %p435_p9 = scmp.lt.u32.totalorder %s431_s17, %s612_s0 }
  0x16   :  { %p437_p10 = pnand %p435_p9, %p432_p8 }
  0x18   :  { %440 = shalt.err (!%p437_p10)
}
  0x19   :  { %s441_s22 = scalar_lea.vmem %s23_s27, 128  ;;  %p446_p12 = scmp.lt.s32.totalorder %s23_s27, %s23_s27 }
  0x1a   :  { %p442_p11 = scmp.ne.s32.totalorder %s23_s27, %s441_s22  ;;  %p447_p13 = scmp.lt.s32.totalorder %s441_s22, %s441_s22 }
  0x1c   :  { %p448_p0 = por %p447_p13, %p446_p12 }
  0x1e   :  { %p449_p1 = pnand %p448_p0, %p442_p11 }
  0x20   :  { %452 = shalt.err (!%p449_p1)
}
  0x21   :  { %25 = dma.hbm_to_vmem [thread:$0]  %s612_s0, 128, %s23_s27, [#allocation4]  }
  0x22   :  { %s505_s24 = smov [#allocation8]   ;;  %s453_s29 = scalar_lea.hbm %s615_s3, 1024 }
  0x23   :  { %s43_s25 = sshll.u32 %s505_s24, 4  ;;  %p454_p2 = scmp.ne.s32.totalorder %s615_s3, %s453_s29  ;;  %s44_s25 = int_to_ptr.vmem [resolvable:$true] %s43_s25 }
  0x24   :  { %p457_p3 = scmp.lt.u32.totalorder %s453_s29, %s615_s3 }
  0x26   :  { %p459_p4 = pnand %p457_p3, %p454_p2 }
  0x28   :  { %462 = shalt.err (!%p459_p4)
}
  0x29   :  { %s463_s11 = scalar_lea.vmem %s44_s25, 1024  ;;  %p468_p6 = scmp.lt.s32.totalorder %s44_s25, %s44_s25 }
  0x2a   :  { %p464_p5 = scmp.ne.s32.totalorder %s44_s25, %s463_s11  ;;  %p469_p7 = scmp.lt.s32.totalorder %s463_s11, %s463_s11 }
  0x2c   :  { %p470_p8 = por %p469_p7, %p468_p6 }
  0x2e   :  { %p471_p9 = pnand %p470_p8, %p464_p5 }
  0x30   :  { %474 = shalt.err (!%p471_p9)
}
  0x31   :  { %s506_s0 = smov 128   ;;  %s507_s27 = smov 8  }
  0x32   :  { %49 = dma.hbm_to_vmem [thread:$0]  %s615_s3, 1024, %s44_s25, [#allocation7], %s506_s0, %s506_s0, %s507_s27  }
  0x33   :  { %497 = dma.done.wait [#allocation4], 128  }
  0x34   :  { %498 = vsyncadd [#allocation4], 4294967168 }
  0x35   :  { %499 = dma.done.wait [#allocation7], 1152  }
  0x36   :  { %500 = vsyncadd [#allocation7], 4294966144  ;;  %v508_v0 = vmov 0.0   ;;  %vm509_vm0 = vmmov 0   ;;  %v510_v1 = vmov 0.0|0.0   ;;  %vm74_vm1 = vcmask 64512  }
  0x37   :  { %355 = vmatprep.subr.mxu0 %v508_v0  ;;  %357 = vmatprep.mubr.msk.f32.mxu0 %vm509_vm0, %v508_v0  ;;  %v66_v2 = vld [vmem:[#allocation6] sm:$0xff]  ;;  %v65_v3 = vld [vmem:[#allocation3] sm:$0xff]  ;;  %v149_v4 = vld [vmem:[#allocation8] sm:$0xff]  ;;  %vm164_vm2 = vcmask 523264   ;;  %v241_v27 = vstv %s618_s6  ;;  %s511_s20 = smov [#allocation9]   ;;  %vm318_vm3 = vcmask 57344  }
  0x38   :  { %384 = vmatprep.subr.bf16.mxu1 %v510_v1  ;;  %376 = vmatprep.mubr.msk.f32.mxu1 %vm509_vm0, %v508_v0  ;;  %v150_v5 = vld [vmem:[#allocation8 + $0x8] sm:$0xff]  ;;  %v151_v7 = vld [vmem:[#allocation8 + $0x10] sm:$0xff]  ;;  %v152_v8 = vld [vmem:[#allocation8 + $0x18] sm:$0xff]  ;;  %s326_s21 = sshll.u32 %s511_s20, 4  ;;  %s327_s21 = int_to_ptr.vmem [resolvable:$true] %s326_s21 }
  0x39   :  { %356 = vmatpush3.msra.mxu0 %v66_v2  ;;  %v385_v6 = vpack.c.bf16 %v150_v5, %v149_v4  ;;  %v388_v9 = vpack.c.bf16 %v152_v8, %v151_v7  ;;  %v153_v10 = vld [vmem:[#allocation8 + $0x20] sm:$0xff]  ;;  %v154_v11 = vld [vmem:[#allocation8 + $0x28] sm:$0xff]  ;;  %v155_v13 = vld [vmem:[#allocation8 + $0x30] sm:$0xff]  ;;  %s479_s22 = scalar_lea.vmem %s327_s21, 32  ;;  %p480_p11 = scmp.lt.s32.totalorder %s327_s21, %s327_s21 }
  0x3a   :  { %358 = vmatmul.mubr.msk.f32.vlgmr.msra.gmra.mrb[0].mxu0 %vm74_vm1, %v65_v3  ;;  %379 = vmatprep.subr.mxu0 %v508_v0  ;;  %v391_v12 = vpack.c.bf16 %v154_v11, %v153_v10  ;;  %v156_v14 = vld [vmem:[#allocation8 + $0x38] sm:$0xff]  ;;  %v336_v16 = vld [vmem:[%s614_s2] ss:$0 sm:$0xff] }
  0x3b   :  { %381 = vmatprep.mubr.msk.f32.mxu0 %vm509_vm0, %v508_v0  ;;  %386 = vmatpush3.bf16.msra.mxu1 %v385_v6  ;;  %v394_v15 = vpack.c.bf16 %v156_v14, %v155_v13  ;;  %v338_v21 = vld [vmem:[%s616_s4] ss:$0 sm:$0xff]  ;;  %s475_s4 = scalar_lea.vmem %s327_s21, 16 }
  0x3c   :  { %387 = vmatprep.subr.bf16.mxu1 %v510_v1  ;;  %v239_v26 = vld [vmem:[%s617_s5] sm:$0x1]  ;;  %p476_p10 = scmp.ne.s32.totalorder %s327_s21, %s475_s4  ;;  %p481_p12 = scmp.lt.s32.totalorder %s479_s22, %s475_s4 }
  0x3e   :  { %p482_p13 = por %p481_p12, %p480_p11 }
  0x3f   :  { %389 = vmatpush3.bf16.msra.mxu1 %v388_v9 }
  0x40   :  { %390 = vmatprep.subr.bf16.mxu1 %v510_v1  ;;  %p483_p0 = pnand %p482_p13, %p476_p10 }
  0x43   :  { %392 = vmatpush3.bf16.msra.mxu1 %v391_v12 }
  0x44   :  { %393 = vmatprep.subr.bf16.mxu1 %v510_v1 }
  0x47   :  { %395 = vmatpush3.bf16.msra.mxu1 %v394_v15 }
 0x10d   :  { %v144_v17 = vpop.f32.mrb[0].mxu0 }
 0x10e   :  { %v145_v18 = vadd.f32 %v336_v16, %v144_v17  ;;  %v359_v19 = vpop.f32.mrb[1].mxu0 }
 0x110   :  { %405 = vtanh.f32 %v145_v18 }
 0x11a   :  { %v406_v20 = vpop.eup %405 }
 0x11b   :  { %377 = vmatmul.mubr.msk.f32.vlgmr.msra.gmra.mrb[0].mxu1 %vm164_vm2, %v406_v20 }
 0x1ee   :  { %v234_v22 = vpop.f32.mrb[0].mxu1 }
 0x1ef   :  { %v235_v23 = vadd.f32 %v338_v21, %v234_v22  ;;  %v378_v24 = vpop.f32.mrb[1].mxu1 }
 0x1f1   :  { %407 = vtanh.f32 %v235_v23 }
 0x1fb   :  { %v408_v25 = vpop.eup %407 }
 0x1fc   :  { %380 = vmatpush3.xpose.msk.msra.mxu0 %vm164_vm2, %v408_v25 }
 0x1ff   :  { %382 = vmatmul.mubr.msk.f32.vlgmr.msra.gmra.mrb[2].mxu0 %vm164_vm2, %v239_v26 }
 0x2d2   :  { %v314_v28 = vpop.f32.mrb[2].mxu0 }
 0x2d3   :  { %v315_v29 = vadd.f32 %v314_v28, %v241_v27  ;;  %v383_v30 = vpop.f32.mrb[3].mxu0 }
 0x2d5   :  { %319 = vst.msk [vmem:[#allocation9] sm:$0x1] %vm318_vm3, %v315_v29 }
 0x2d6   :  { %486 = shalt.err (!%p483_p0)
}
 0x2d7   :  { %s487_s6 = scalar_lea.hbm %s619_s7, 16 }
 0x2d8   :  { %p488_p1 = scmp.ne.s32.totalorder %s619_s7, %s487_s6  ;;  %p491_p2 = scmp.lt.u32.totalorder %s487_s6, %s619_s7 }
 0x2da   :  { %p493_p3 = pnand %p491_p2, %p488_p1 }
 0x2dc   :  { %496 = shalt.err (!%p493_p3)
}
 0x2dd   :  { %329 = dma.vmem_to_hbm [thread:$0]  %s327_s21, 16, %s619_s7, [#allocation5]  }
 0x2de   :  { %501 = dma.done.wait [#allocation5], 16  }
 0x2df   :  { %502 = vsyncadd [#allocation5], 4294967280 }
 0x2e0   :  { %333 = vsyncpa [#allocation4], 1 }
 0x2e1   :  { %334 = vsyncpa [#allocation7], 1 }
 0x2e2   :  { %335 = vsyncpa [#allocation5], 1 }

</bundles_post_ra>
